<compile_context>
chip_gen: v6e
topology: v6e:2x2x1
jax: 0.10.0
libtpu: 0.0.40
codegen_flags: <defaults>
</compile_context>

<pallas_src>
import math
import functools

import jax
import jax.numpy as jnp
from jax import lax
from jax.experimental import pallas as pl
from jax.experimental.pallas import tpu as pltpu


# ---------------------------------------------------------------------------
# Tile-size helper: largest multiple of `quantum` <= preferred dividing `dim`,
# otherwise the full dim (always a legal block).
# ---------------------------------------------------------------------------
def _choose_tile(dim, preferred, quantum=128):
    if dim <= preferred:
        return dim
    cand = (preferred // quantum) * quantum
    while cand >= quantum:
        if dim % cand == 0:
            return cand
        cand -= quantum
    return dim


# ---------------------------------------------------------------------------
# Kernel 1: fused linear projection  y = x @ W + b, written out as n column chunks
# ---------------------------------------------------------------------------
def _proj_kernel(x_ref, w_ref, b_ref, *out_refs):
    x = x_ref[0].astype(jnp.bfloat16)                       # [TS, Din]
    y = jnp.dot(x, w_ref[...], preferred_element_type=jnp.float32)
    y = y + b_ref[...]                                      # f32 accumulate + bias
    d = out_refs[0].shape[-1]
    for i, o in enumerate(out_refs):
        o[0] = y[:, i * d:(i + 1) * d].astype(o.dtype)


def _fused_linear(x, w_t, b, d_out, n_out, *, block_rows=256):
    """x: [B, S, Din]; w_t: [Din, n_out*d_out] bf16 (pre-transposed); b: [1, n_out*d_out] f32.
    Returns n_out bf16 arrays of shape [B, S, d_out]."""
    B, S, Din = x.shape
    ts = _choose_tile(S, block_rows)
    grid = (B, S // ts)

    out_shape = tuple(jax.ShapeDtypeStruct((B, S, d_out), jnp.bfloat16)
                      for _ in range(n_out))
    out_specs = [pl.BlockSpec((1, ts, d_out), lambda b_, s_: (b_, s_, 0))
                 for _ in range(n_out)]

    return pl.pallas_call(
        _proj_kernel,
        out_shape=out_shape,
        grid_spec=pltpu.PrefetchScalarGridSpec(
            num_scalar_prefetch=0,
            grid=grid,
            in_specs=[
                pl.BlockSpec((1, ts, Din), lambda b_, s_: (b_, s_, 0)),
                pl.BlockSpec((Din, n_out * d_out), lambda b_, s_: (0, 0)),
                pl.BlockSpec((1, n_out * d_out), lambda b_, s_: (0, 0)),
            ],
            out_specs=out_specs,
        ),
        compiler_params=pltpu.CompilerParams(
            dimension_semantics=("parallel", "parallel")),
    )(x, w_t, b)


# ---------------------------------------------------------------------------
# Kernel 2: flash-style attention + fused output projection
# ---------------------------------------------------------------------------
def _flash_kernel(*refs, num_heads, head_dim, has_mask):
    if has_mask:
        (q_ref, k_ref, v_ref, mask_ref, wo_ref, bo_ref,
         out_ref, m_sc, l_sc, acc_sc) = refs
    else:
        (q_ref, k_ref, v_ref, wo_ref, bo_ref,
         out_ref, m_sc, l_sc, acc_sc) = refs
        mask_ref = None

    ki = pl.program_id(2)
    nk = pl.num_programs(2)

    @pl.when(ki == 0)
    def _init():
        m_sc[...] = jnp.full(m_sc.shape, -jnp.inf, m_sc.dtype)
        l_sc[...] = jnp.zeros(l_sc.shape, l_sc.dtype)
        acc_sc[...] = jnp.zeros(acc_sc.shape, acc_sc.dtype)

    q = q_ref[0].astype(jnp.bfloat16)          # [TQ, D] (Q already pre-scaled via Wq)
    k = k_ref[0].astype(jnp.bfloat16)          # [TK, D]
    v = v_ref[0].astype(jnp.bfloat16)          # [TK, D]

    if has_mask:
        # Additive mask bias, computed once per (q,k) tile and shared by all heads.
        # mask_ref[0] is int8 {0,1}; shape (TQ, TK) or (1, TK) (broadcasts over TQ).
        bias = jnp.where(mask_ref[0] == 0, jnp.float32(-1e9), jnp.float32(0.0))
    else:
        bias = None

    for h in range(num_heads):
        hs = slice(h * head_dim, (h + 1) * head_dim)
        # scores: q_h @ k_h^T via contracting last dims (no in-kernel transpose)
        s = lax.dot_general(q[:, hs], k[:, hs],
                            dimension_numbers=(((1,), (1,)), ((), ())),
                            preferred_element_type=jnp.float32)   # [TQ, TK] f32
        if bias is not None:
            s = s + bias

        m_prev = m_sc[:, h:h + 1]                                  # [TQ, 1]
        m_new = jnp.maximum(m_prev, jnp.max(s, axis=-1, keepdims=True))
        alpha = jnp.exp(m_prev - m_new)                            # [TQ, 1]
        p = jnp.exp(s - m_new)                                     # [TQ, TK] f32
        l_sc[:, h:h + 1] = alpha * l_sc[:, h:h + 1] + jnp.sum(p, axis=-1, keepdims=True)
        acc_sc[:, hs] = alpha * acc_sc[:, hs] + jnp.dot(
            p.astype(jnp.bfloat16), v[:, hs], preferred_element_type=jnp.float32)
        m_sc[:, h:h + 1] = m_new

    @pl.when(ki == nk - 1)
    def _finalize():
        for h in range(num_heads):
            hs = slice(h * head_dim, (h + 1) * head_dim)
            inv_l = pl.reciprocal(l_sc[:, h:h + 1], approx=True)
            acc_sc[:, hs] = acc_sc[:, hs] * inv_l
        ctx = acc_sc[...].astype(jnp.bfloat16)                     # [TQ, D]
        out = jnp.dot(ctx, wo_ref[...],
                      preferred_element_type=jnp.float32) + bo_ref[...]
        out_ref[0] = out.astype(out_ref.dtype)


# ---------------------------------------------------------------------------
# Wrapper mirroring MultiHeadAttention.forward
# ---------------------------------------------------------------------------
def multi_head_attention(query, key=None, value=None, mask=None, *,
                         params, num_heads, block_q=256, block_k=256):
    if key is None:
        key = query
    if value is None:
        value = key

    wq, bq, wk, bk, wv, bv, wo, bo = params
    B, Sq, D = query.shape
    Sk = key.shape[1]
    assert D % num_heads == 0, "model_dim must be divisible by num_heads"
    head_dim = D // num_heads
    scale = 1.0 / math.sqrt(head_dim)

    # Pre-transpose weights to [Din, Dout], fold 1/sqrt(head_dim) into the Q
    # projection (exact: scalar commutes through the affine map), fuse QKV, bf16.
    w_qkv_t = jnp.concatenate([wq.T * scale, wk.T, wv.T], axis=1).astype(jnp.bfloat16)
    b_qkv = jnp.concatenate([bq * scale, bk, bv], axis=1).astype(jnp.float32)
    wo_t = wo.T.astype(jnp.bfloat16)
    bo_f = bo.astype(jnp.float32)

    # ----- QKV projections (fused into as few matmuls as input identity allows) ---
    if key is query and value is query:
        q_p, k_p, v_p = _fused_linear(query, w_qkv_t, b_qkv, D, 3)
    else:
        (q_p,) = _fused_linear(query, w_qkv_t[:, :D], b_qkv[:, :D], D, 1)
        if key is value:
            k_p, v_p = _fused_linear(key, w_qkv_t[:, D:], b_qkv[:, D:], D, 2)
        else:
            (k_p,) = _fused_linear(key, w_qkv_t[:, D:2 * D], b_qkv[:, D:2 * D], D, 1)
            (v_p,) = _fused_linear(value, w_qkv_t[:, 2 * D:], b_qkv[:, 2 * D:], D, 1)

    tq = _choose_tile(Sq, block_q)
    tk = _choose_tile(Sk, block_k)
    grid = (B, Sq // tq, Sk // tk)

    # ----- mask prep: int8 (4x less HBM traffic than f32); [B,1,Sk] handled via
    # index_map instead of materializing a [B,Sq,Sk] broadcast. ------------------
    has_mask = mask is not None
    in_specs = [
        pl.BlockSpec((1, tq, D), lambda b, qi, ki: (b, qi, 0)),    # Q
        pl.BlockSpec((1, tk, D), lambda b, qi, ki: (b, ki, 0)),    # K
        pl.BlockSpec((1, tk, D), lambda b, qi, ki: (b, ki, 0)),    # V
    ]
    args = [q_p, k_p, v_p]
    if has_mask:
        assert mask.ndim == 3, "mask must be [B, Sq, Sk] or [B, 1, Sk]"
        mask_i8 = (mask != 0).astype(jnp.int8)
        if mask_i8.shape[1] == 1:
            in_specs.append(pl.BlockSpec((1, 1, tk), lambda b, qi, ki: (b, 0, ki)))
        else:
            in_specs.append(pl.BlockSpec((1, tq, tk), lambda b, qi, ki: (b, qi, ki)))
        args.append(mask_i8)
    in_specs += [
        pl.BlockSpec((D, D), lambda b, qi, ki: (0, 0)),            # Wo^T (bf16)
        pl.BlockSpec((1, D), lambda b, qi, ki: (0, 0)),            # bo
    ]
    args += [wo_t, bo_f]

    kernel = functools.partial(_flash_kernel, num_heads=num_heads,
                               head_dim=head_dim, has_mask=has_mask)

    return pl.pallas_call(
        kernel,
        out_shape=jax.ShapeDtypeStruct((B, Sq, D), query.dtype),
        grid_spec=pltpu.PrefetchScalarGridSpec(
            num_scalar_prefetch=0,
            grid=grid,
            in_specs=in_specs,
            out_specs=pl.BlockSpec((1, tq, D), lambda b, qi, ki: (b, qi, 0)),
            scratch_shapes=[
                pltpu.VMEM((tq, num_heads), jnp.float32),   # running max  m
                pltpu.VMEM((tq, num_heads), jnp.float32),   # running sum  l
                pltpu.VMEM((tq, D), jnp.float32),           # f32 accumulator
            ],
        ),
        compiler_params=pltpu.CompilerParams(
            dimension_semantics=("parallel", "parallel", "arbitrary")),
    )(*args)


# ---------------------------------------------------------------------------
# Pure-JAX reference mirroring the PyTorch forward (eval mode, f32)
# ---------------------------------------------------------------------------
def reference_mha(query, key, value, mask, params, *, num_heads):
    wq, bq, wk, bk, wv, bv, wo, bo = params
    if key is None:
        key = query
    if value is None:
        value = key
    B, Sq, D = query.shape
    Sk = key.shape[1]
    hd = D // num_heads
    q = query @ wq.T + bq
    k = key @ wk.T + bk
    v = value @ wv.T + bv
    q = q.reshape(B, Sq, num_heads, hd).transpose(0, 2, 1, 3)
    k = k.reshape(B, Sk, num_heads, hd).transpose(0, 2, 1, 3)
    v = v.reshape(B, Sk, num_heads, hd).transpose(0, 2, 1, 3)
    scores = (q @ k.transpose(0, 1, 3, 2)) / math.sqrt(hd)
    if mask is not None:
        scores = jnp.where(mask[:, None, :, :] == 0, -1e9, scores)
    attn = jax.nn.softmax(scores, axis=-1)
    ctx = (attn @ v).transpose(0, 2, 1, 3).reshape(B, Sq, D)
    return ctx @ wo.T + bo


if __name__ == "__main__":
    # Small shapes consistent with the module: batch=2, seq=8, model_dim=32, heads=4
    B, S, D, H = 2, 8, 32, 4

    key0 = jax.random.PRNGKey(0)
    keys = jax.random.split(key0, 12)

    def lin_init(kw, kb, d):
        bound = 1.0 / math.sqrt(d)
        w = jax.random.uniform(kw, (d, d), jnp.float32, -bound, bound)
        b = jax.random.uniform(kb, (1, d), jnp.float32, -bound, bound)
        return w, b

    wq, bq = lin_init(keys[0], keys[1], D)
    wk, bk = lin_init(keys[2], keys[3], D)
    wv, bv = lin_init(keys[4], keys[5], D)
    wo, bo = lin_init(keys[6], keys[7], D)
    params = (wq, bq, wk, bk, wv, bv, wo, bo)

    query = jax.random.normal(keys[8], (B, S, D), jnp.float32)
    xkv = jax.random.normal(keys[9], (B, S, D), jnp.float32)

    # mask: all-ones except mask out the last key position for batch 1
    mask = jnp.ones((B, S, S), jnp.float32)
    mask = mask.at[1, :, -1].set(0.0)

    # bf16 MXU operands (f32 accumulation) -> compare with a loosened tolerance
    tol = dict(atol=2e-2, rtol=2e-2)

    # 1) masked self-attention (fused QKV path, full [B,Sq,Sk] mask)
    out = jax.block_until_ready(
        multi_head_attention(query, None, None, mask, params=params, num_heads=H))
    ref = reference_mha(query, None, None, mask, params, num_heads=H)
    assert jnp.allclose(out, ref, **tol), "masked self-attention mismatch"

    # 2) unmasked self-attention (no-mask fast path: mask block never loaded)
    out2 = jax.block_until_ready(
        multi_head_attention(query, None, None, None, params=params, num_heads=H))
    ref2 = reference_mha(query, None, None, None, params, num_heads=H)
    assert jnp.allclose(out2, ref2, **tol), "unmasked self-attention mismatch"

    # 3) cross-attention (separate Q / fused KV projection path)
    out3 = jax.block_until_ready(
        multi_head_attention(query, xkv, None, None, params=params, num_heads=H))
    ref3 = reference_mha(query, xkv, None, None, params, num_heads=H)
    assert jnp.allclose(out3, ref3, **tol), "cross-attention mismatch"

    # 4) broadcast [B,1,Sk] key-padding mask (handled via index_map, no broadcast)
    kp_mask = jnp.ones((B, 1, S), jnp.float32)
    kp_mask = kp_mask.at[0, :, -2:].set(0.0)
    out4 = jax.block_until_ready(
        multi_head_attention(query, None, None, kp_mask, params=params, num_heads=H))
    ref4 = reference_mha(query, None, None, kp_mask, params, num_heads=H)
    assert jnp.allclose(out4, ref4, **tol), "key-padding-mask attention mismatch"

    print("KERNEL_OK")
</pallas_src>

<mosaic_0001>
module attributes {stable_mosaic.version = 11 : i64} {
  func.func @_proj_kernel(%arg0: i32, %arg1: i32, %arg2: memref<1x8x32xf32, #tpu.memory_space<vmem>>, %arg3: memref<32x96xbf16, #tpu.memory_space<vmem>>, %arg4: memref<1x96xf32, #tpu.memory_space<vmem>>, %arg5: memref<1x8x32xbf16, #tpu.memory_space<vmem>>, %arg6: memref<1x8x32xbf16, #tpu.memory_space<vmem>>, %arg7: memref<1x8x32xbf16, #tpu.memory_space<vmem>>) attributes {dimension_semantics = [#tpu.dimension_semantics<parallel>, #tpu.dimension_semantics<parallel>], iteration_bounds = array<i64: 2, 1>, scalar_prefetch = 0 : i64, scratch_operands = 0 : i64, tpu.core_type = #tpu.core_type<tc>, window_params = [{transform_indices = @transform_0, window_bounds = array<i64: 1, 8, 32>}, {pipeline_mode = #tpu.pipeline_mode<synchronous>, transform_indices = @transform_1, window_bounds = array<i64: 32, 96>}, {pipeline_mode = #tpu.pipeline_mode<synchronous>, transform_indices = @transform_2, window_bounds = array<i64: 1, 96>}, {transform_indices = @transform_3, window_bounds = array<i64: 1, 8, 32>}, {transform_indices = @transform_4, window_bounds = array<i64: 1, 8, 32>}, {transform_indices = @transform_5, window_bounds = array<i64: 1, 8, 32>}]} {
    %c0 = arith.constant 0 : index
    %c0_0 = arith.constant 0 : index
    %c0_1 = arith.constant 0 : index
    %0 = vector.load %arg2[%c0, %c0_0, %c0_1] : memref<1x8x32xf32, #tpu.memory_space<vmem>>, vector<1x8x32xf32>
    %1 = vector.shape_cast %0 : vector<1x8x32xf32> to vector<8x32xf32>
    %2 = arith.truncf %1 : vector<8x32xf32> to vector<8x32xbf16>
    %c0_2 = arith.constant 0 : index
    %c0_3 = arith.constant 0 : index
    %3 = vector.load %arg3[%c0_2, %c0_3] : memref<32x96xbf16, #tpu.memory_space<vmem>>, vector<32x96xbf16>
    %cst = arith.constant dense<0.000000e+00> : vector<8x96xf32>
    %4 = tpu.matmul %2, %3, %cst {dimension_numbers = #tpu.dot_dimension_numbers<[1], [0], [0], [1], [0, 0, 1, 1], [], []>} : vector<8x32xbf16>, vector<32x96xbf16>, vector<8x96xf32> -> vector<8x96xf32>
    %c0_4 = arith.constant 0 : index
    %c0_5 = arith.constant 0 : index
    %5 = vector.load %arg4[%c0_4, %c0_5] : memref<1x96xf32, #tpu.memory_space<vmem>>, vector<1x96xf32>
    %6 = vector.broadcast %5 : vector<1x96xf32> to vector<8x96xf32>
    %7 = arith.addf %4, %6 : vector<8x96xf32>
    %8 = vector.extract_strided_slice %7 {offsets = [0, 0], sizes = [8, 32], strides = [1, 1]} : vector<8x96xf32> to vector<8x32xf32>
    %9 = arith.truncf %8 : vector<8x32xf32> to vector<8x32xbf16>
    %c0_6 = arith.constant 0 : index
    %c0_7 = arith.constant 0 : index
    %c0_8 = arith.constant 0 : index
    %10 = vector.load %arg5[%c0_6, %c0_7, %c0_8] : memref<1x8x32xbf16, #tpu.memory_space<vmem>>, vector<1x8x32xbf16>
    %11 = vector.shape_cast %10 : vector<1x8x32xbf16> to vector<8x32xbf16>
    %12 = vector.shape_cast %9 : vector<8x32xbf16> to vector<1x8x32xbf16>
    tpu.vector_store %arg5[%c0_6, %c0_7, %c0_8], %12 {strides = array<i32>} : memref<1x8x32xbf16, #tpu.memory_space<vmem>>, vector<1x8x32xbf16>,
    %13 = vector.extract_strided_slice %7 {offsets = [0, 32], sizes = [8, 32], strides = [1, 1]} : vector<8x96xf32> to vector<8x32xf32>
    %14 = arith.truncf %13 : vector<8x32xf32> to vector<8x32xbf16>
    %c0_9 = arith.constant 0 : index
    %c0_10 = arith.constant 0 : index
    %c0_11 = arith.constant 0 : index
    %15 = vector.load %arg6[%c0_9, %c0_10, %c0_11] : memref<1x8x32xbf16, #tpu.memory_space<vmem>>, vector<1x8x32xbf16>
    %16 = vector.shape_cast %15 : vector<1x8x32xbf16> to vector<8x32xbf16>
    %17 = vector.shape_cast %14 : vector<8x32xbf16> to vector<1x8x32xbf16>
    tpu.vector_store %arg6[%c0_9, %c0_10, %c0_11], %17 {strides = array<i32>} : memref<1x8x32xbf16, #tpu.memory_space<vmem>>, vector<1x8x32xbf16>,
    %18 = vector.extract_strided_slice %7 {offsets = [0, 64], sizes = [8, 32], strides = [1, 1]} : vector<8x96xf32> to vector<8x32xf32>
    %19 = arith.truncf %18 : vector<8x32xf32> to vector<8x32xbf16>
    %c0_12 = arith.constant 0 : index
    %c0_13 = arith.constant 0 : index
    %c0_14 = arith.constant 0 : index
    %20 = vector.load %arg7[%c0_12, %c0_13, %c0_14] : memref<1x8x32xbf16, #tpu.memory_space<vmem>>, vector<1x8x32xbf16>
    %21 = vector.shape_cast %20 : vector<1x8x32xbf16> to vector<8x32xbf16>
    %22 = vector.shape_cast %19 : vector<8x32xbf16> to vector<1x8x32xbf16>
    tpu.vector_store %arg7[%c0_12, %c0_13, %c0_14], %22 {strides = array<i32>} : memref<1x8x32xbf16, #tpu.memory_space<vmem>>, vector<1x8x32xbf16>,
    return
  }
  func.func @transform_0(%arg0: i32, %arg1: i32) -> (i32, i32, i32) {
    %c0_i32 = arith.constant 0 : i32
    %c0_i32_0 = arith.constant 0 : i32
    return %arg0, %arg1, %c0_i32 : i32, i32, i32
  }
  func.func @transform_1(%arg0: i32, %arg1: i32) -> (i32, i32) {
    %c0_i32 = arith.constant 0 : i32
    %c0_i32_0 = arith.constant 0 : i32
    %c0_i32_1 = arith.constant 0 : i32
    return %c0_i32, %c0_i32_0 : i32, i32
  }
  func.func @transform_2(%arg0: i32, %arg1: i32) -> (i32, i32) {
    %c0_i32 = arith.constant 0 : i32
    %c0_i32_0 = arith.constant 0 : i32
    %c0_i32_1 = arith.constant 0 : i32
    return %c0_i32, %c0_i32_0 : i32, i32
  }
  func.func @transform_3(%arg0: i32, %arg1: i32) -> (i32, i32, i32) {
    %c0_i32 = arith.constant 0 : i32
    %c0_i32_0 = arith.constant 0 : i32
    return %arg0, %arg1, %c0_i32 : i32, i32, i32
  }
  func.func @transform_4(%arg0: i32, %arg1: i32) -> (i32, i32, i32) {
    %c0_i32 = arith.constant 0 : i32
    %c0_i32_0 = arith.constant 0 : i32
    return %arg0, %arg1, %c0_i32 : i32, i32, i32
  }
  func.func @transform_5(%arg0: i32, %arg1: i32) -> (i32, i32, i32) {
    %c0_i32 = arith.constant 0 : i32
    %c0_i32_0 = arith.constant 0 : i32
    return %arg0, %arg1, %c0_i32 : i32, i32, i32
  }
}

</mosaic_0001>

<bundles_post_ra>
// kernel: tpu_custom_call.1
= control target key start
LH: loop header
LB: loop body
LE: loop exit
PB: predicated region body
PF: predicated region fallthrough
CT: control target
= control target key end

     0   :  { %s1197_s0 = inlined_call_operand.hbm [shape: f32[2,8,32], index: 0, kind: input, shape index: {}]   ;;  %s1198_s1 = inlined_call_operand.hbm [shape: bf16[32,96], index: 1, kind: input, shape index: {}]   ;;  %s1199_s2 = inlined_call_operand.vmem [shape: f32[1,96], index: 2, kind: input, shape index: {}]   ;;  %s1200_s3 = inlined_call_operand.hbm [shape: bf16[2,8,32], index: 3, kind: output, shape index: {0}]   ;;  %s1201_s4 = inlined_call_operand.hbm [shape: bf16[2,8,32], index: 4, kind: output, shape index: {1}]   ;;  %s1202_s5 = inlined_call_operand.hbm [shape: bf16[2,8,32], index: 5, kind: output, shape index: {2}]  }
   0x1   :  { %1206 = sst [smem:[#allocation16_spill]] %s1198_s1 }
   0x2   :  { %11 = vsyncpa [#allocation3], 0 }
   0x3   :  { %13 = vsyncpa [#allocation3 + $0x1], 0 }
   0x4   :  { %14 = vsyncpa [#allocation6], 0 }
   0x5   :  { %15 = vsyncpa [#allocation4], 0 }
   0x6   :  { %17 = vsyncpa [#allocation4 + $0x1], 0 }
   0x7   :  { %18 = vsyncpa [#allocation9], 0 }
   0x8   :  { %20 = vsyncpa [#allocation9 + $0x1], 0  ;;  %s950_s18 = smov 0   ;;  %s952_s19 = smov 0  }
   0x9   :  { %s954_s20 = smov 0   ;;  %s956_s21 = smov 0  }
   0xa   :  { %s958_s22 = smov 0   ;;  %s960_s23 = smov 0  }
   0xb LB: > { %s981_s24 = sadd.s32 4294967295, %s907_s23   ;;  %s1203_s25 = sadd.s32 4294967294, %s907_s23   ;;  %s907_s23 = sphi %s960_s23, %s26_s23   ;;  %s903_s22 = sphi %s958_s22, %s1227_s22   ;;  %s899_s21 = sphi %s956_s21, %s1226_s21   ;;  %s895_s20 = sphi %s954_s20, %s1225_s20   ;;  %s891_s19 = sphi %s952_s19, %s1224_s19   ;;  %s887_s18 = sphi %s950_s18, %s1223_s18  }
   0xc   : > { %p60_p0 = scmp.ne.s32.totalorder %s891_s19, %s887_s18  ;;  %p1205_p1 = scmp.eq.s32.totalorder %s981_s24, 0 }
   0xd   : > { %p134_p3 = scmp.eq.s32.totalorder %s1203_s25, 1  ;;  %p586_p5 = scmp.ge.s32.totalorder %s907_s23, 1 }
   0xe   : > { %p992_p4 = por %p1205_p1, %p60_p0  ;;  %p197_p7 = scmp.lt.s32.totalorder %s907_s23, 3 }
   0xf   : > { %p997_p6 = por %p134_p3, %p60_p0  ;;  %s909_s29 = smov [#allocation5]  }
  0x10   : > { %p1002_p8 = pnand %p586_p5, %p197_p7  ;;  %s209_s30 = sshll.u32 %s909_s29, 4  ;;  %s210_s30 = int_to_ptr.vmem [resolvable:$true] %s209_s30 }
  0x11   : > { %s1208_s27 = scalar_select %p997_p6, 1, 0 }
  0x12   : > { %p634_p9 = pneg %p1002_p8  ;;  %s38_s7 = sadd.s32 1, %s903_s22 }
  0x13   : > { %s724_s8 = scalar_lea.vmem %s210_s30, 256  ;;  %p732_p5 = scmp.lt.s32.totalorder %s210_s30, %s210_s30 }
  0x14   : > { %p1011_p11 = pnand %p634_p9, %p1205_p1  ;;  %p725_p13 = scmp.ne.s32.totalorder %s210_s30, %s724_s8 }
  0x15   : > { %p733_p7 = scmp.lt.s32.totalorder %s724_s8, %s724_s8 }
  0x16   : > { %p715_p12 = pneg %p1011_p11 }
  0x17   : > { %p734_p2 = por %p733_p7, %p732_p5 }
  0x18   : > { %p727_p0 = pnand %p725_p13, %p715_p12 }
  0x1a   : > { %p728_p3 = pneg %p727_p0 }
  0x1c   : > { %p735_p6 = pnand %p734_p2, %p728_p3 }
  0x1e   : > { %738 = shalt.err (!%p735_p6)
}
  0x1f   : > { %s910_s9 = smov 64   ;;  %s911_s10 = smov 4  }
  0x20   : > { %s1211_s1 = sld [smem:[#allocation16_spill]]  ;;  %p40_p2 = scmp.ge.s32.totalorder %s38_s7, 2 }
  0x21   : > { %s47_s13 = sadd.s32 1, %s895_s20  ;;  %p54_p6 = scmp.ne.s32.totalorder %s895_s20, %s891_s19 }
  0x22   : > { %p55_p9 = scmp.eq.s32.totalorder %s907_s23, 0  ;;  %s1229_s7 = smov (%p40_p2, %s38_s7), 0 }
  0x23   : > { %1212 = sst [smem:[#allocation15_spill]] %s1229_s7  ;;  %p1214_p13 = scmp.eq.s32.totalorder %s981_s24, 1 }
  0x24   : > { %p1029_p12 = por %p55_p9, %p54_p6  ;;  %s42_s16 = ssub.s32 %s903_s22, %s1229_s7 }
  0x25   : > { %p1035_p0 = por %p1214_p13, %p54_p6  ;;  %p653_p3 = scmp.lt.s32.totalorder %s907_s23, 2 }
  0x26   : > { %637 = dma.hbm_to_vmem [thread:$0]  (!%p1011_p11), %s1211_s1, 256, %s210_s30, [#allocation6], %s910_s9, %s910_s9, %s911_s10  }
  0x27   : > { %p45_p11 = scmp.eq.s32.totalorder %s42_s16, 0  ;;  %s226_s17 = sand.u32 1, %s895_s20  }
  0x28   : > { %s589_s29 = sshll.u32 %s226_s17, 3  ;;  %s590_s6 = sshll.u32 %s903_s22, 7 }
  0x29   : > { %s1044_s30 = scalar_select %p45_p11, %s895_s20, %s47_s13  }
  0x2a   : > { %s236_s10 = scalar_lea.hbm %s1197_s0, %s590_s6  ;;  %s230_s11 = scalar_lea.vmem [#allocation2], %s589_s29 }
  0x2b   : > { %s238_s12 = sshll.u32 %s230_s11, 4  ;;  %p1052_p5 = pnand %p653_p3, %p1029_p12  ;;  %s239_s12 = int_to_ptr.vmem [resolvable:$true] %s238_s12 }
  0x2c   : > { %s227_s1 = scalar_lea.sflag [#allocation3], %s226_s17  ;;  %s752_s16 = scalar_lea.vmem %s239_s12, 128 }
  0x2d   : > { %p741_p7 = pneg %p1052_p5  ;;  %p753_p2 = scmp.ne.s32.totalorder %s239_s12, %s752_s16 }
  0x2e   : > { %s912_s13 = smov [#allocation2]  }
  0x2f   : > { %p755_p6 = pnand %p753_p2, %p741_p7  ;;  %s757_s7 = sshll.u32 %s912_s13, 4  ;;  %s758_s7 = int_to_ptr.vmem [resolvable:$false] %s757_s7 }
  0x30   : > { %s759_s6 = scalar_lea.vmem %s758_s7, 256  ;;  %p760_p13 = scmp.lt.s32.totalorder %s239_s12, %s758_s7 }
  0x31   : > { %p756_p9 = pneg %p755_p6  ;;  %p761_p11 = scmp.lt.s32.totalorder %s759_s6, %s752_s16 }
  0x33   : > { %p762_p10 = por %p761_p11, %p760_p13 }
  0x35   : > { %p763_p1 = pnand %p762_p10, %p756_p9 }
  0x37   : > { %766 = shalt.err (!%p763_p1)
}
  0x38   : > { %641 = dma.hbm_to_vmem [thread:$0]  (!%p1052_p5), %s236_s10, 128, %s239_s12, %s227_s1  }
  0x39   : > { %247 = sbr.rel (%p1002_p8) target bundleno = 422 (0x1a6), region = 32  ;;  %s1063_s14 = sand.u32 (!%p1002_p8), 1, %s891_s19  }
  0x3a   : > { %s592_s17 = sshll.u32 (!%p1002_p8), %s1063_s14, 3  ;;  %s250_s29 = scalar_lea.sflag (!%p1002_p8), [#allocation3], %s1063_s14 }
  0x3b   : > { %s253_s8 = scalar_lea.vmem (!%p1002_p8), [#allocation2], %s592_s17 }
  0x3e   : > { %870 = dma.done.wait (%p992_p4), %s250_s29, 128  }
  0x3f   : > { %872 = vsyncadd (%p992_p4), %s250_s29, 4294967168  ;;  %p1217_p1 = scmp.eq.s32.totalorder %s981_s24, 0 }
  0x41   : > { %874 = dma.done.wait (%p1217_p1), [#allocation6], 256   ;;  %p1218_p10 = pmov %p1217_p1 }
  0x42   : > { %v913_v0 = vmov 0.0   ;;  %vm914_vm0 = vmmov 0   ;;  %v711_v1 = vld [vmem:[#allocation5 + $0x8] sm:$0xff]   ;;  %v712_v2 = vld [vmem:[#allocation5] sm:$0xff]   ;;  %v295_v3 = vld [vmem:[%s253_s8] sm:$0xff]  ;;  %vm320_vm1 = vcmask 261120  }
  0x43   : > { %876 = vsyncadd (%p1218_p10), [#allocation6], 4294967040  ;;  %614 = vmatprep.subr.bf16.mxu0 %v913_v0  ;;  %618 = vmatprep.mubr.msk.bf16.mxu0 %vm914_vm0, %v913_v0  ;;  %v296_v4 = vpack.c.bf16 %v295_v3, %v295_v3  ;;  %s1076_s1 = sshll.u32 %s1063_s14, 2  ;;  %v597_v5 = vld [vmem:[%s1199_s2] ss:$0 sm:$0xff]  ;;  %s1082_s28 = sshll.u32 %s899_s21, 6 }
  0x44   : > { %615 = vmatpush3.bf16.msra.mxu0 %v711_v1  ;;  %s279_s7 = scalar_lea.vmem [#allocation7], %s1076_s1  ;;  %vm365_vm2 = vcmask 257024   ;;  %s1089_s12 = scalar_lea.hbm %s1200_s3, %s1082_s28 }
  0x45   : > { %616 = vmatprep.subr.bf16.mxu0 %v913_v0  ;;  %s403_s9 = sshll.u32 %s279_s7, 4  ;;  %s915_s21 = smov 96   ;;  %s1091_s9 = int_to_ptr.vmem [resolvable:$true] %s403_s9 }
  0x46   : > { %s379_s16 = scalar_lea.sflag [#allocation4], %s1063_s14  ;;  %s767_s13 = scalar_lea.vmem %s1091_s9, 64 }
  0x47   : > { %p768_p4 = scmp.ne.s32.totalorder %s1091_s9, %s767_s13  ;;  %s916_s6 = smov [#allocation7]  }
  0x48   : > { %617 = vmatpush3.bf16.msra.mxu0 %v712_v2  ;;  %s771_s17 = sshll.u32 %s916_s6, 4  ;;  %s772_s17 = int_to_ptr.vmem [resolvable:$false] %s771_s17 }
  0x49   : > { %p769_p8 = pnand %p768_p4, %p1035_p0  ;;  %s773_s29 = scalar_lea.vmem %s772_s17, 128 }
  0x4a   : > { %p774_p3 = scmp.lt.s32.totalorder %s1091_s9, %s772_s17  ;;  %p775_p5 = scmp.lt.s32.totalorder %s773_s29, %s767_s13 }
  0x4b   : > { %619 = vmatmul.mubr.msk.bf16.vlgmr.msra.gmra.mxu0 %vm320_vm1, %v296_v4  ;;  %p770_p12 = pneg %p769_p8 }
  0x4c   : > { %p776_p7 = por %p775_p5, %p774_p3 }
  0x4e   : > { %p777_p2 = pnand %p776_p7, %p770_p12 }
 0x10b   : > { %v358_v6 = vpop.f32.mrf.mxu0 }
 0x10c   : > { %v359_v7 = vadd.f32 %v597_v5, %v358_v6 }
 0x10d   : > { %v620_v8 = vpop.f32.mrf.mxu0 }
 0x10e   : > { %v364_v9 = vpack.c.bf16 %v359_v7, %v359_v7 }
 0x10f   : > { %v361_v10 = vpop.f32.mrf.mxu0 }
 0x110   : > { %370 = vrot.lane.b32.xlu0 %v364_v9, %s915_s21  ;;  %366 = vst.msk [vmem:[%s279_s7] sm:$0xf] %vm365_vm2, %v364_v9 }
 0x111   : > { %v621_v11 = vpop.f32.mrf.mxu0 }
 0x112   : > { %780 = shalt.err (!%p777_p2)
}
 0x113   : > { %s781_s8 = scalar_lea.hbm %s1089_s12, 64  ;;  %s785_s26 = scalar_lea.hbm %s1200_s3, 128 }
 0x114   : > { %p782_p6 = scmp.ne.s32.totalorder %s1089_s12, %s781_s8  ;;  %p786_p11 = scmp.lt.s32.totalorder %s1089_s12, %s1200_s3 }
 0x115   : > { %p787_p1 = scmp.lt.s32.totalorder %s785_s26, %s781_s8 }
 0x116   : > { %p783_p9 = pnand %p782_p6, %p1035_p0 }
 0x117   : > { %p788_p10 = por %p787_p1, %p786_p11 }
 0x118   : > { %p784_p13 = pneg %p783_p9 }
 0x11a   : > { %p789_p4 = pnand %p788_p10, %p784_p13 }
 0x11c   : > { %792 = shalt.err (!%p789_p4)
}
 0x11d   : > { %628 = dma.vmem_to_hbm [thread:$0]  (%p1035_p0), %s1091_s9, 64, %s1089_s12, %s379_s16  }
 0x11e   : > { %s917_s11 = smov 64   ;;  %s383_s21 = sand.u32 1, %s981_s24  }
 0x11f   : > { %374 = vrot.lane.b32.xlu0 %v364_v9, %s917_s11  ;;  %s286_s13 = scalar_lea.vmem [#allocation8], %s1076_s1  ;;  %s1121_s8 = scalar_lea.hbm %s1201_s4, %s1082_s28 }
 0x120   : > { %s417_s6 = sshll.u32 %s286_s13, 4  ;;  %s293_s14 = scalar_lea.vmem [#allocation10], %s1076_s1  ;;  %s1123_s6 = int_to_ptr.vmem [resolvable:$true] %s417_s6 }
 0x121   : > { %s431_s25 = sshll.u32 %s293_s14, 4  ;;  %s1129_s9 = scalar_lea.sflag [#allocation9], %s383_s21  ;;  %s432_s25 = int_to_ptr.vmem [resolvable:$true] %s431_s25 }
 0x122   : > { %s793_s24 = scalar_lea.vmem %s1123_s6, 64  ;;  %s918_s12 = smov [#allocation8]  }
 0x123   : > { %p794_p8 = scmp.ne.s32.totalorder %s1123_s6, %s793_s24  ;;  %s797_s16 = sshll.u32 %s918_s12, 4  ;;  %s798_s16 = int_to_ptr.vmem [resolvable:$false] %s797_s16 }
 0x124   : > { %s799_s26 = scalar_lea.vmem %s798_s16, 128  ;;  %p800_p5 = scmp.lt.s32.totalorder %s1123_s6, %s798_s16 }
 0x125   : > { %p795_p12 = pnand %p794_p8, %p1035_p0  ;;  %p801_p7 = scmp.lt.s32.totalorder %s799_s26, %s793_s24 }
 0x127   : > { %p796_p3 = pneg %p795_p12  ;;  %p802_p2 = por %p801_p7, %p800_p5 }
 0x129   : > { %p803_p6 = pnand %p802_p2, %p796_p3 }
 0x182   : > { %v371_v12 = vpop.permute.xlu0 %370 }
 0x183   : > { %373 = vst.msk [vmem:[%s286_s13] sm:$0xf] %vm365_vm2, %v371_v12 }
 0x184   : > { %806 = shalt.err (!%p803_p6)
}
 0x185   : > { %s807_s7 = scalar_lea.hbm %s1121_s8, 64  ;;  %s811_s21 = scalar_lea.hbm %s1201_s4, 128 }
 0x186   : > { %p808_p9 = scmp.ne.s32.totalorder %s1121_s8, %s807_s7  ;;  %p812_p1 = scmp.lt.s32.totalorder %s1121_s8, %s1201_s4 }
 0x187   : > { %p813_p10 = scmp.lt.s32.totalorder %s811_s21, %s807_s7 }
 0x188   : > { %p809_p13 = pnand %p808_p9, %p1035_p0 }
 0x189   : > { %p814_p4 = por %p813_p10, %p812_p1 }
 0x18a   : > { %p810_p11 = pneg %p809_p13 }
 0x18c   : > { %p815_p8 = pnand %p814_p4, %p810_p11 }
 0x18e   : > { %818 = shalt.err (!%p815_p8)
}
 0x18f   : > { %629 = dma.vmem_to_hbm [thread:$0]  (%p1035_p0), %s1123_s6, 64, %s1121_s8, %s1129_s9  }
 0x190   : > { %s429_s12 = scalar_lea.hbm %s1202_s5, %s1082_s28  ;;  %s819_s16 = scalar_lea.vmem %s432_s25, 64 }
 0x191   : > { %v375_v13 = vpop.permute.xlu0 %374  ;;  %p820_p12 = scmp.ne.s32.totalorder %s432_s25, %s819_s16  ;;  %s919_s26 = smov [#allocation10]  }
 0x192   : > { %377 = vst.msk [vmem:[%s293_s14] sm:$0xf] %vm365_vm2, %v375_v13  ;;  %s823_s7 = sshll.u32 %s919_s26, 4  ;;  %s824_s7 = int_to_ptr.vmem [resolvable:$false] %s823_s7 }
 0x193   : > { %p821_p3 = pnand %p820_p12, %p1035_p0  ;;  %s825_s10 = scalar_lea.vmem %s824_s7, 128 }
 0x194   : > { %p826_p7 = scmp.lt.s32.totalorder %s432_s25, %s824_s7  ;;  %p827_p2 = scmp.lt.s32.totalorder %s825_s10, %s819_s16 }
 0x195   : > { %p822_p5 = pneg %p821_p3 }
 0x196   : > { %p828_p6 = por %p827_p2, %p826_p7 }
 0x198   : > { %p829_p9 = pnand %p828_p6, %p822_p5 }
 0x19a   : > { %832 = shalt.err (!%p829_p9)
}
 0x19b   : > { %s833_s28 = scalar_lea.hbm %s429_s12, 64  ;;  %s837_s8 = scalar_lea.hbm %s1202_s5, 128 }
 0x19c   : > { %p834_p13 = scmp.ne.s32.totalorder %s429_s12, %s833_s28  ;;  %p838_p10 = scmp.lt.s32.totalorder %s429_s12, %s1202_s5 }
 0x19d   : > { %p839_p4 = scmp.lt.s32.totalorder %s837_s8, %s833_s28 }
 0x19e   : > { %p835_p11 = pnand %p834_p13, %p1035_p0 }
 0x19f   : > { %p840_p8 = por %p839_p4, %p838_p10 }
 0x1a0   : > { %p836_p1 = pneg %p835_p11 }
 0x1a2   : > { %p841_p12 = pnand %p840_p8, %p836_p1 }
 0x1a4   : > { %844 = shalt.err (!%p841_p12)
}
 0x1a5   : > { %630 = dma.vmem_to_hbm [thread:$0]  (%p1035_p0), %s432_s25, 64, %s429_s12, %s1129_s9  }
 0x1a6 PF: > { %s443_s21 = sand.u32 1, %s887_s18   ;;  %p1219_p3 = scmp.ne.s32.totalorder %s1208_s27, 0 }
 0x1a7   : > { %p1220_p5 = scmp.ge.s32.totalorder %s907_s23, 2  ;;  %s444_s13 = scalar_lea.sflag [#allocation4], %s443_s21 }
 0x1a9   : > { %p643_p7 = pnand %p1220_p5, %p1219_p3 }
 0x1ab   : > { %p644_p2 = pneg %p643_p7 }
 0x1ad   : > { %878 = dma.done.wait (%p644_p2), %s444_s13, 64  }
 0x1ae   : > { %880 = vsyncadd (%p644_p2), %s444_s13, 4294967232  ;;  %s1221_s17 = sadd.s32 4294967294, %s907_s23  }
 0x1af   : > { %s452_s29 = sand.u32 1, %s1221_s17  }
 0x1b0   : > { %s453_s24 = scalar_lea.sflag [#allocation9], %s452_s29 }
 0x1b1   : > { %882 = dma.done.wait (%p644_p2), %s453_s24, 128  }
 0x1b2   : > { %884 = vsyncadd (%p644_p2), %s453_s24, 4294967168  ;;  %s26_s23 = sadd.s32 1, %s907_s23   ;;  %s1222_s27 = sld [smem:[#allocation15_spill]] }
 0x1b3   : > { %p23_p0 = scmp.ge.s32.totalorder %s26_s23, 4   ;;  %s1223_s18 = smov %s891_s19 }
 0x1b4   : > { %s1224_s19 = smov %s895_s20  ;;  %s1225_s20 = smov %s1044_s30 }
 0x1b5   : > { %s1226_s21 = smov %s903_s22  ;;  %25 = sbr.rel (!%p23_p0) target bundleno = 11 (0xb), region = 113 }
 0x1b8   : > { %s1227_s22 = smov %s1222_s27 }
 0x1ba   :  { %467 = vsyncpa [#allocation3], 1 }
 0x1bb   :  { %469 = vsyncpa [#allocation3 + $0x1], 1 }
 0x1bc   :  { %470 = vsyncpa [#allocation6], 1 }
 0x1bd   :  { %471 = vsyncpa [#allocation4], 1 }
 0x1be   :  { %473 = vsyncpa [#allocation4 + $0x1], 1 }
 0x1bf   :  { %474 = vsyncpa [#allocation9], 1 }
 0x1c0   :  { %476 = vsyncpa [#allocation9 + $0x1], 1 }

</bundles_post_ra>
